<compile_context>
chip_gen: v6e
topology: v6e:2x2x1
jax: 0.10.0
libtpu: 0.0.40
codegen_flags: <defaults>
</compile_context>

<pallas_src>
import functools

import jax
import jax.numpy as jnp
from jax.experimental import pallas as pl
from jax.experimental.pallas import tpu as pltpu


# ----------------------------- Pallas kernels ------------------------------ #

def _matmul_bias_kernel(a_ref, w_ref, bias_ref, o_ref, acc_ref, *, relu):
    """acc += a @ w ; on last K step: o = maybe_relu(acc + bias)."""
    @pl.when(pl.program_id(2) == 0)
    def _():
        acc_ref[...] = jnp.zeros_like(acc_ref)

    acc_ref[...] += jnp.dot(a_ref[...], w_ref[...],
                            preferred_element_type=jnp.float32)

    @pl.when(pl.program_id(2) == pl.num_programs(2) - 1)
    def _():
        out = acc_ref[...] + bias_ref[...]
        if relu:
            out = jnp.maximum(out, 0.0)
        o_ref[...] = out.astype(o_ref.dtype)


def _matmul_bias_res_relu_kernel(a_ref, w_ref, bias_ref, res_ref, o_ref, acc_ref):
    """acc += a @ w ; on last K step: o = relu(acc + bias + residual)."""
    @pl.when(pl.program_id(2) == 0)
    def _():
        acc_ref[...] = jnp.zeros_like(acc_ref)

    acc_ref[...] += jnp.dot(a_ref[...], w_ref[...],
                            preferred_element_type=jnp.float32)

    @pl.when(pl.program_id(2) == pl.num_programs(2) - 1)
    def _():
        out = acc_ref[...] + bias_ref[...] + res_ref[...].astype(jnp.float32)
        o_ref[...] = jnp.maximum(out, 0.0).astype(o_ref.dtype)


# ------------------------------- JAX glue ---------------------------------- #

def _round_up(x, m):
    return (x + m - 1) // m * m


def _pick_tile(dim, target, align):
    """Pick a tile (multiple of `align`) and the padded dim it evenly divides."""
    t = target if dim >= target else _round_up(dim, align)
    return t, _round_up(dim, t)


def _pad2d(x, rows, cols):
    return jnp.pad(x, ((0, rows - x.shape[0]), (0, cols - x.shape[1])))


def _im2col(x_nhwc, ksize, stride, padding):
    """Extract conv patches. Returns ((N*Ho*Wo, k*k*Cin), (N, Ho, Wo))."""
    N, H, W, C = x_nhwc.shape
    Ho = (H + 2 * padding - ksize) // stride + 1
    Wo = (W + 2 * padding - ksize) // stride + 1
    xp = jnp.pad(x_nhwc, ((0, 0), (padding, padding), (padding, padding), (0, 0)))
    cols = []
    for dy in range(ksize):
        for dx in range(ksize):
            cols.append(xp[:, dy:dy + stride * Ho:stride, dx:dx + stride * Wo:stride, :])
    patches = jnp.stack(cols, axis=3)                       # (N, Ho, Wo, k*k, C)
    return patches.reshape(N * Ho * Wo, ksize * ksize * C), (N, Ho, Wo)


def _fold_bn(gamma, beta, mean, var, eps=1e-5):
    """Fold eval-mode BatchNorm into per-channel (scale, bias), shape (C,)."""
    scale = gamma / jnp.sqrt(var + eps)
    bias = beta - mean * scale
    return scale, bias


def _fused_matmul(a, w, bias, residual=None, *, relu,
                  tm_target=512, tk_target=512, tn_target=256):
    """out[:M,:N] = epilogue(a @ w + bias [+ residual]) via a tiled Pallas matmul.

    a: (M, K) any float dtype (cast to bf16), w: (K, N) (cast to bf16, BN scale
    pre-folded), bias: (N,) f32, residual: optional (M, N) f32.
    """
    M, K = a.shape
    Kw, N = w.shape
    assert K == Kw

    # Tiles: M aligned to sublanes (8), K and N lane-dense (multiples of 128).
    tm, M_pad = _pick_tile(M, tm_target, 8)
    tk, K_pad = _pick_tile(K, tk_target, 128)
    tn, N_pad = _pick_tile(N, tn_target, 128)

    a_p = _pad2d(a.astype(jnp.bfloat16), M_pad, K_pad)
    w_p = _pad2d(w.astype(jnp.bfloat16), K_pad, N_pad)
    bias_p = _pad2d(bias.reshape(1, N).astype(jnp.float32), 1, N_pad)

    in_specs = [
        pl.BlockSpec((tm, tk), lambda i, j, k: (i, k)),
        pl.BlockSpec((tk, tn), lambda i, j, k: (k, j)),
        pl.BlockSpec((1, tn), lambda i, j, k: (0, j)),
    ]
    args = [a_p, w_p, bias_p]
    res_bytes = 0
    if residual is None:
        kernel = functools.partial(_matmul_bias_kernel, relu=relu)
    else:
        res_p = _pad2d(residual.astype(jnp.float32), M_pad, N_pad)
        in_specs.append(pl.BlockSpec((tm, tn), lambda i, j, k: (i, j)))
        args.append(res_p)
        res_bytes = res_p.size * 4
        kernel = _matmul_bias_res_relu_kernel

    grid = (M_pad // tm, N_pad // tn, K_pad // tk)
    cost = pl.CostEstimate(
        flops=2 * M_pad * K_pad * N_pad,
        transcendentals=0,
        bytes_accessed=a_p.size * 2 + w_p.size * 2 + M_pad * N_pad * 4 + res_bytes,
    )

    out = pl.pallas_call(
        kernel,
        out_shape=jax.ShapeDtypeStruct((M_pad, N_pad), jnp.float32),
        grid_spec=pltpu.PrefetchScalarGridSpec(
            num_scalar_prefetch=0,
            grid=grid,
            in_specs=in_specs,
            out_specs=pl.BlockSpec((tm, tn), lambda i, j, k: (i, j)),
            scratch_shapes=[pltpu.VMEM((tm, tn), jnp.float32)],
        ),
        compiler_params=pltpu.CompilerParams(
            dimension_semantics=("parallel", "parallel", "arbitrary"),
            vmem_limit_bytes=48 * 1024 * 1024,  # comfortable on v7x's 64 MiB/TC
        ),
        cost_estimate=cost,
    )(*args)
    return out[:M, :N]


@functools.partial(jax.jit, static_argnames=("stride",))
def basic_block_forward(x_nchw, params, *, stride):
    """BasicBlock.forward: relu(bn2(conv2(relu(bn1(conv1(x))))) + shortcut(x))."""
    x = jnp.transpose(x_nchw, (0, 2, 3, 1)).astype(jnp.float32)  # NCHW -> NHWC
    Cin = x.shape[-1]
    planes = params["conv1"].shape[0]

    # --- conv1 (3x3, stride) + bn1 + relu: one tiled matmul ---
    s1, b1 = _fold_bn(*params["bn1"])
    patches1, (N, Ho, Wo) = _im2col(x, 3, stride, 1)
    w1 = (jnp.transpose(params["conv1"], (2, 3, 1, 0)).reshape(9 * Cin, planes)
          * s1[None, :])
    out1 = _fused_matmul(patches1, w1, b1, relu=True)            # (M, planes)
    out1_nhwc = out1.reshape(N, Ho, Wo, planes)

    # --- conv2 (3x3, stride 1) + bn2 + shortcut + relu: one tiled matmul ---
    s2, b2 = _fold_bn(*params["bn2"])
    patches2, _ = _im2col(out1_nhwc, 3, 1, 1)
    w2 = (jnp.transpose(params["conv2"], (2, 3, 1, 0)).reshape(9 * planes, planes)
          * s2[None, :])

    M = N * Ho * Wo
    if "conv_sc" in params:
        # Fuse the 1x1-stride-s shortcut conv into conv2's K reduction.
        ssc, bsc = _fold_bn(*params["bn_sc"])
        x_sc, _ = _im2col(x, 1, stride, 0)                       # (M, Cin)
        wsc = params["conv_sc"].reshape(planes, Cin).T * ssc[None, :]
        a_cat = jnp.concatenate([patches2, x_sc], axis=1)
        w_cat = jnp.concatenate([w2, wsc], axis=0)
        out = _fused_matmul(a_cat, w_cat, b2 + bsc, relu=True)
    else:
        # Identity shortcut (stride == 1, Cin == planes): residual add in f32.
        res = x.reshape(M, planes)
        out = _fused_matmul(patches2, w2, b2, residual=res, relu=True)

    out = out.reshape(N, Ho, Wo, planes)
    return jnp.transpose(out, (0, 3, 1, 2))                      # NHWC -> NCHW


# --------------------------- pure-JAX reference ----------------------------- #

def _ref_conv(x_nhwc, w_oihw, stride, padding):
    return jax.lax.conv_general_dilated(
        x_nhwc, jnp.transpose(w_oihw, (2, 3, 1, 0)),
        window_strides=(stride, stride),
        padding=[(padding, padding), (padding, padding)],
        dimension_numbers=("NHWC", "HWIO", "NHWC"))


def _ref_bn(y, gamma, beta, mean, var, eps=1e-5):
    return (y - mean) / jnp.sqrt(var + eps) * gamma + beta


def basic_block_reference(x_nchw, params, *, stride):
    x = jnp.transpose(x_nchw, (0, 2, 3, 1))
    out = jax.nn.relu(_ref_bn(_ref_conv(x, params["conv1"], stride, 1), *params["bn1"]))
    out = _ref_bn(_ref_conv(out, params["conv2"], 1, 1), *params["bn2"])
    if "conv_sc" in params:
        sc = _ref_bn(_ref_conv(x, params["conv_sc"], stride, 0), *params["bn_sc"])
    else:
        sc = x
    out = jax.nn.relu(out + sc)
    return jnp.transpose(out, (0, 3, 1, 2))


# ---------------------------------- main ------------------------------------ #

def _init_params(key, in_planes, planes, stride):
    ks = jax.random.split(key, 12)

    def bn(k0, k1, k2, k3, c):
        gamma = 1.0 + 0.1 * jax.random.normal(k0, (c,), jnp.float32)
        beta = 0.1 * jax.random.normal(k1, (c,), jnp.float32)
        mean = 0.1 * jax.random.normal(k2, (c,), jnp.float32)
        var = 0.5 + 0.5 * jnp.abs(jax.random.normal(k3, (c,), jnp.float32))
        return (gamma, beta, mean, var)

    params = {
        "conv1": 0.1 * jax.random.normal(ks[0], (planes, in_planes, 3, 3), jnp.float32),
        "bn1": bn(ks[1], ks[2], ks[3], ks[4], planes),
        "conv2": 0.1 * jax.random.normal(ks[5], (planes, planes, 3, 3), jnp.float32),
        "bn2": bn(ks[6], ks[7], ks[8], ks[9], planes),
    }
    if stride != 1 or in_planes != planes:  # expansion == 1
        params["conv_sc"] = 0.1 * jax.random.normal(ks[10], (planes, in_planes, 1, 1),
                                                    jnp.float32)
        kb = jax.random.split(ks[11], 4)
        params["bn_sc"] = bn(kb[0], kb[1], kb[2], kb[3], planes)
    return params


def _check(x, params, stride, expected_shape):
    out = jax.block_until_ready(basic_block_forward(x, params, stride=stride))
    ref = jax.block_until_ready(basic_block_reference(x, params, stride=stride))
    assert out.shape == expected_shape, (out.shape, expected_shape)
    err = float(jnp.max(jnp.abs(out - ref)))
    # bf16 matmul operands with f32 accumulation -> relaxed tolerance vs f32 ref.
    assert jnp.allclose(out, ref, rtol=2e-2, atol=2e-2), err
    return err


if __name__ == "__main__":
    key = jax.random.PRNGKey(0)
    k1, k2, k3, k4 = jax.random.split(key, 4)

    # Case 1: downsampling block (1x1-conv shortcut fused into conv2's matmul).
    in_planes, planes, stride = 4, 8, 2
    x1 = jax.random.normal(k1, (2, in_planes, 16, 16), jnp.float32)   # NCHW
    p1 = _init_params(k2, in_planes, planes, stride)
    _check(x1, p1, stride, (2, planes, 8, 8))

    # Case 2: identity-shortcut block (residual add fused into the epilogue).
    x2 = jax.random.normal(k3, (2, 8, 16, 16), jnp.float32)
    p2 = _init_params(k4, 8, 8, 1)
    _check(x2, p2, 1, (2, 8, 16, 16))

    print("KERNEL_OK")
</pallas_src>

<mosaic_0001>
module attributes {stable_mosaic.version = 11 : i64} {
  func.func @_matmul_bias_kernel(%arg0: i32, %arg1: i32, %arg2: i32, %arg3: memref<128x128xbf16, #tpu.memory_space<vmem>>, %arg4: memref<128x128xbf16, #tpu.memory_space<vmem>>, %arg5: memref<1x128xf32, #tpu.memory_space<vmem>>, %arg6: memref<128x128xf32, #tpu.memory_space<vmem>>, %arg7: memref<128x128xf32, #tpu.memory_space<vmem>>) attributes {dimension_semantics = [#tpu.dimension_semantics<parallel>, #tpu.dimension_semantics<parallel>, #tpu.dimension_semantics<arbitrary>], iteration_bounds = array<i64: 1, 1, 1>, scalar_prefetch = 0 : i64, scratch_operands = 1 : i64, tpu.core_type = #tpu.core_type<tc>, window_params = [{transform_indices = @transform_0, window_bounds = array<i64: 128, 128>}, {transform_indices = @transform_1, window_bounds = array<i64: 128, 128>}, {transform_indices = @transform_2, window_bounds = array<i64: 1, 128>}, {transform_indices = @transform_3, window_bounds = array<i64: 128, 128>}]} {
    %c0_i32 = arith.constant 0 : i32
    %0 = arith.cmpi eq, %arg2, %c0_i32 : i32
    %1 = arith.extui %0 : i1 to i32
    %c0_i32_0 = arith.constant 0 : i32
    %2 = arith.cmpi ne, %1, %c0_i32_0 : i32
    scf.if %2 {
      %cst_10 = arith.constant 0.000000e+00 : f32
      %12 = vector.broadcast %cst_10 : f32 to vector<128x128xf32>
      %c0_11 = arith.constant 0 : index
      %c0_12 = arith.constant 0 : index
      %13 = vector.load %arg7[%c0_11, %c0_12] : memref<128x128xf32, #tpu.memory_space<vmem>>, vector<128x128xf32>
      tpu.vector_store %arg7[%c0_11, %c0_12], %12 {strides = array<i32>} : memref<128x128xf32, #tpu.memory_space<vmem>>, vector<128x128xf32>,
    } else {
    }
    %c0 = arith.constant 0 : index
    %c0_1 = arith.constant 0 : index
    %3 = vector.load %arg7[%c0, %c0_1] : memref<128x128xf32, #tpu.memory_space<vmem>>, vector<128x128xf32>
    %c0_2 = arith.constant 0 : index
    %c0_3 = arith.constant 0 : index
    %4 = vector.load %arg3[%c0_2, %c0_3] : memref<128x128xbf16, #tpu.memory_space<vmem>>, vector<128x128xbf16>
    %c0_4 = arith.constant 0 : index
    %c0_5 = arith.constant 0 : index
    %5 = vector.load %arg4[%c0_4, %c0_5] : memref<128x128xbf16, #tpu.memory_space<vmem>>, vector<128x128xbf16>
    %cst = arith.constant dense<0.000000e+00> : vector<128x128xf32>
    %6 = tpu.matmul %4, %5, %cst {dimension_numbers = #tpu.dot_dimension_numbers<[1], [0], [0], [1], [0, 0, 1, 1], [], []>} : vector<128x128xbf16>, vector<128x128xbf16>, vector<128x128xf32> -> vector<128x128xf32>
    %7 = arith.addf %3, %6 : vector<128x128xf32>
    %c0_6 = arith.constant 0 : index
    %c0_7 = arith.constant 0 : index
    %8 = vector.load %arg7[%c0_6, %c0_7] : memref<128x128xf32, #tpu.memory_space<vmem>>, vector<128x128xf32>
    tpu.vector_store %arg7[%c0_6, %c0_7], %7 {strides = array<i32>} : memref<128x128xf32, #tpu.memory_space<vmem>>, vector<128x128xf32>,
    %c0_i32_8 = arith.constant 0 : i32
    %9 = arith.cmpi eq, %arg2, %c0_i32_8 : i32
    %10 = arith.extui %9 : i1 to i32
    %c0_i32_9 = arith.constant 0 : i32
    %11 = arith.cmpi ne, %10, %c0_i32_9 : i32
    scf.if %11 {
      %c0_10 = arith.constant 0 : index
      %c0_11 = arith.constant 0 : index
      %12 = vector.load %arg7[%c0_10, %c0_11] : memref<128x128xf32, #tpu.memory_space<vmem>>, vector<128x128xf32>
      %c0_12 = arith.constant 0 : index
      %c0_13 = arith.constant 0 : index
      %13 = vector.load %arg5[%c0_12, %c0_13] : memref<1x128xf32, #tpu.memory_space<vmem>>, vector<1x128xf32>
      %14 = vector.broadcast %13 : vector<1x128xf32> to vector<128x128xf32>
      %15 = arith.addf %12, %14 : vector<128x128xf32>
      %cst_14 = arith.constant 0.000000e+00 : f32
      %16 = vector.broadcast %cst_14 : f32 to vector<128x128xf32>
      %17 = arith.maximumf %15, %16 : vector<128x128xf32>
      %c0_15 = arith.constant 0 : index
      %c0_16 = arith.constant 0 : index
      %18 = vector.load %arg6[%c0_15, %c0_16] : memref<128x128xf32, #tpu.memory_space<vmem>>, vector<128x128xf32>
      tpu.vector_store %arg6[%c0_15, %c0_16], %17 {strides = array<i32>} : memref<128x128xf32, #tpu.memory_space<vmem>>, vector<128x128xf32>,
    } else {
    }
    return
  }
  func.func @transform_0(%arg0: i32, %arg1: i32, %arg2: i32) -> (i32, i32) {
    %c0_i32 = arith.constant 0 : i32
    return %arg0, %arg2 : i32, i32
  }
  func.func @transform_1(%arg0: i32, %arg1: i32, %arg2: i32) -> (i32, i32) {
    %c0_i32 = arith.constant 0 : i32
    return %arg2, %arg1 : i32, i32
  }
  func.func @transform_2(%arg0: i32, %arg1: i32, %arg2: i32) -> (i32, i32) {
    %c0_i32 = arith.constant 0 : i32
    %c0_i32_0 = arith.constant 0 : i32
    return %c0_i32, %arg1 : i32, i32
  }
  func.func @transform_3(%arg0: i32, %arg1: i32, %arg2: i32) -> (i32, i32) {
    %c0_i32 = arith.constant 0 : i32
    return %arg0, %arg1 : i32, i32
  }
}

</mosaic_0001>

<bundles_post_ra>
// kernel: basic_block_forward.2
= control target key start
LH: loop header
LB: loop body
LE: loop exit
PB: predicated region body
PF: predicated region fallthrough
CT: control target
= control target key end

     0   :  { %s602_s1 = inlined_call_operand.vmem [shape: bf16[128,128], index: 1, kind: input, shape index: {}]   ;;  %s603_s0 = inlined_call_operand.vmem [shape: bf16[128,128], index: 0, kind: input, shape index: {}]   ;;  %s604_s2 = inlined_call_operand.vmem [shape: f32[1,128], index: 2, kind: input, shape index: {}]   ;;  %s605_s3 = inlined_call_operand.vmem [shape: f32[128,128], index: 3, kind: output, shape index: {}]  }
   0x1   :  { %v467_v0 = vld [vmem:[%s602_s1 + $0x38] sm:$0xff]   ;;  %v468_v1 = vld [vmem:[%s602_s1 + $0x30] sm:$0xff]   ;;  %v469_v2 = vld [vmem:[%s602_s1 + $0x28] sm:$0xff]  }
   0x2   :  { %419 = vmatprep.subr.bf16.mxu0 %v467_v0  ;;  %451 = vmatprep.subr.bf16.mxu1 %v467_v0  ;;  %v470_v3 = vld [vmem:[%s602_s1 + $0x20] sm:$0xff]   ;;  %v471_v6 = vld [vmem:[%s602_s1 + $0x18] sm:$0xff]   ;;  %v472_v7 = vld [vmem:[%s602_s1 + $0x10] sm:$0xff]  }
   0x3   :  { %420 = vmatpush3.bf16.msra.mxu0 %v467_v0  ;;  %459 = vmatpush3.bf16.msra.mxu1 %v467_v0  ;;  %v475_v4 = vld [vmem:[%s603_s0] sm:$0xff]   ;;  %v473_v8 = vld [vmem:[%s602_s1 + $0x8] sm:$0xff]   ;;  %v479_v12 = vld [vmem:[%s603_s0 + $0x10] sm:$0xff]  }
   0x4   :  { %421 = vmatprep.subr.bf16.mxu0 %v468_v1  ;;  %452 = vmatprep.subr.bf16.mxu1 %v468_v1  ;;  %v476_v5 = vld [vmem:[%s603_s0 + $0x20] sm:$0xff]   ;;  %v477_v10 = vld [vmem:[%s603_s0 + $0x8] sm:$0xff]   ;;  %v480_v13 = vld [vmem:[%s603_s0 + $0x30] sm:$0xff]  }
   0x5   :  { %435 = vmatprep.mubr.bf16.mxu0 %v475_v4  ;;  %443 = vmatprep.mubr.bf16.mxu1 %v476_v5  ;;  %v474_v9 = vld [vmem:[%s602_s1] sm:$0xff]   ;;  %v478_v11 = vld [vmem:[%s603_s0 + $0x28] sm:$0xff]   ;;  %v481_v14 = vld [vmem:[%s603_s0 + $0x18] sm:$0xff]  }
   0x6   :  { %v482_v15 = vld [vmem:[%s603_s0 + $0x38] sm:$0xff]   ;;  %v402_v16 = vld [vmem:[%s604_s2] ss:$0 sm:$0xff] }
   0x7   :  { %422 = vmatpush3.bf16.msra.mxu0 %v468_v1  ;;  %460 = vmatpush3.bf16.msra.mxu1 %v468_v1 }
   0x8   :  { %423 = vmatprep.subr.bf16.mxu0 %v469_v2  ;;  %453 = vmatprep.subr.bf16.mxu1 %v469_v2 }
   0xb   :  { %424 = vmatpush3.bf16.msra.mxu0 %v469_v2  ;;  %461 = vmatpush3.bf16.msra.mxu1 %v469_v2 }
   0xc   :  { %425 = vmatprep.subr.bf16.mxu0 %v470_v3  ;;  %454 = vmatprep.subr.bf16.mxu1 %v470_v3 }
   0xf   :  { %426 = vmatpush3.bf16.msra.mxu0 %v470_v3  ;;  %462 = vmatpush3.bf16.msra.mxu1 %v470_v3 }
  0x10   :  { %427 = vmatprep.subr.bf16.mxu0 %v471_v6  ;;  %455 = vmatprep.subr.bf16.mxu1 %v471_v6 }
  0x13   :  { %428 = vmatpush3.bf16.msra.mxu0 %v471_v6  ;;  %463 = vmatpush3.bf16.msra.mxu1 %v471_v6 }
  0x14   :  { %429 = vmatprep.subr.bf16.mxu0 %v472_v7  ;;  %456 = vmatprep.subr.bf16.mxu1 %v472_v7 }
  0x17   :  { %430 = vmatpush3.bf16.msra.mxu0 %v472_v7  ;;  %464 = vmatpush3.bf16.msra.mxu1 %v472_v7 }
  0x18   :  { %431 = vmatprep.subr.bf16.mxu0 %v473_v8  ;;  %457 = vmatprep.subr.bf16.mxu1 %v473_v8 }
  0x1b   :  { %432 = vmatpush3.bf16.msra.mxu0 %v473_v8  ;;  %465 = vmatpush3.bf16.msra.mxu1 %v473_v8 }
  0x1c   :  { %433 = vmatprep.subr.bf16.mxu0 %v474_v9  ;;  %458 = vmatprep.subr.bf16.mxu1 %v474_v9 }
  0x1f   :  { %434 = vmatpush3.bf16.msra.mxu0 %v474_v9  ;;  %466 = vmatpush3.bf16.msra.mxu1 %v474_v9 }
  0x22   :  { %436 = vmatmul.mubr.bf16.vlgmr.msra.gmra.mxu0 %v477_v10  ;;  %444 = vmatmul.mubr.bf16.vlgmr.msra.gmra.mxu1 %v478_v11 }
  0x23   :  { %439 = vmatprep.mubr.bf16.mxu0 %v479_v12  ;;  %447 = vmatprep.mubr.bf16.mxu1 %v480_v13 }
  0x2a   :  { %440 = vmatmul.mubr.bf16.gmra.mxu0 %v481_v14  ;;  %448 = vmatmul.mubr.bf16.gmra.mxu1 %v482_v15 }
  0xe2   :  { %v437_v17 = vpop.f32.mrf.mxu0  ;;  %v445_v18 = vpop.f32.mrf.mxu1 }
  0xe3   :  { %v336_v19 = vadd.f32 %v437_v17, %v402_v16  ;;  %v344_v20 = vadd.f32 %v445_v18, %v402_v16 }
  0xe4   :  { %v213_v21 = vpop.f32.mrf.mxu0  ;;  %v245_v22 = vpop.f32.mrf.mxu1 }
  0xe5   :  { %v352_v23 = vmax.f32 %v336_v19, 0.0  ;;  %v360_v24 = vmax.f32 %v344_v20, 0.0  ;;  %v334_v25 = vadd.f32 %v402_v16, %v213_v21  ;;  %v342_v26 = vadd.f32 %v402_v16, %v245_v22 }
  0xe6   :  { %v438_v27 = vpop.f32.mrf.mxu0  ;;  %v446_v28 = vpop.f32.mrf.mxu1 }
  0xe7   :  { %368 = vst [vmem:[%s605_s3 + $0x10] sm:$0xff] %v352_v23  ;;  %376 = vst [vmem:[%s605_s3 + $0x50] sm:$0xff] %v360_v24  ;;  %v350_v29 = vmax.f32 %v334_v25, 0.0  ;;  %v358_v30 = vmax.f32 %v342_v26, 0.0  ;;  %v337_v31 = vadd.f32 %v438_v27, %v402_v16  ;;  %v345_v32 = vadd.f32 %v446_v28, %v402_v16 }
  0xe8   :  { %v216_v33 = vpop.f32.mrf.mxu0  ;;  %v248_v34 = vpop.f32.mrf.mxu1 }
  0xe9   :  { %366 = vst [vmem:[%s605_s3] sm:$0xff] %v350_v29  ;;  %374 = vst [vmem:[%s605_s3 + $0x40] sm:$0xff] %v358_v30  ;;  %v353_v35 = vmax.f32 %v337_v31, 0.0  ;;  %v361_v36 = vmax.f32 %v345_v32, 0.0  ;;  %v335_v37 = vadd.f32 %v402_v16, %v216_v33  ;;  %v343_v38 = vadd.f32 %v402_v16, %v248_v34 }
  0xea   :  { %v441_v39 = vpop.f32.mrf.mxu0  ;;  %v449_v40 = vpop.f32.mrf.mxu1 }
  0xeb   :  { %369 = vst [vmem:[%s605_s3 + $0x18] sm:$0xff] %v353_v35  ;;  %377 = vst [vmem:[%s605_s3 + $0x58] sm:$0xff] %v361_v36  ;;  %v351_v41 = vmax.f32 %v335_v37, 0.0  ;;  %v359_v42 = vmax.f32 %v343_v38, 0.0  ;;  %v340_v43 = vadd.f32 %v441_v39, %v402_v16  ;;  %v348_v44 = vadd.f32 %v449_v40, %v402_v16 }
  0xec   :  { %v229_v45 = vpop.f32.mrf.mxu0  ;;  %v261_v46 = vpop.f32.mrf.mxu1 }
  0xed   :  { %367 = vst [vmem:[%s605_s3 + $0x8] sm:$0xff] %v351_v41  ;;  %375 = vst [vmem:[%s605_s3 + $0x48] sm:$0xff] %v359_v42  ;;  %v356_v47 = vmax.f32 %v340_v43, 0.0  ;;  %v364_v48 = vmax.f32 %v348_v44, 0.0  ;;  %v338_v49 = vadd.f32 %v402_v16, %v229_v45  ;;  %v346_v50 = vadd.f32 %v402_v16, %v261_v46 }
  0xee   :  { %v442_v51 = vpop.f32.mrf.mxu0  ;;  %v450_v52 = vpop.f32.mrf.mxu1 }
  0xef   :  { %372 = vst [vmem:[%s605_s3 + $0x30] sm:$0xff] %v356_v47  ;;  %380 = vst [vmem:[%s605_s3 + $0x70] sm:$0xff] %v364_v48  ;;  %v354_v53 = vmax.f32 %v338_v49, 0.0  ;;  %v362_v54 = vmax.f32 %v346_v50, 0.0  ;;  %v341_v55 = vadd.f32 %v442_v51, %v402_v16  ;;  %v349_v56 = vadd.f32 %v450_v52, %v402_v16 }
  0xf0   :  { %v232_v57 = vpop.f32.mrf.mxu0  ;;  %v264_v58 = vpop.f32.mrf.mxu1 }
  0xf1   :  { %370 = vst [vmem:[%s605_s3 + $0x20] sm:$0xff] %v354_v53  ;;  %378 = vst [vmem:[%s605_s3 + $0x60] sm:$0xff] %v362_v54  ;;  %v357_v59 = vmax.f32 %v341_v55, 0.0  ;;  %v365_v60 = vmax.f32 %v349_v56, 0.0  ;;  %v339_v61 = vadd.f32 %v402_v16, %v232_v57  ;;  %v347_v62 = vadd.f32 %v402_v16, %v264_v58 }
  0xf3   :  { %373 = vst [vmem:[%s605_s3 + $0x38] sm:$0xff] %v357_v59  ;;  %381 = vst [vmem:[%s605_s3 + $0x78] sm:$0xff] %v365_v60  ;;  %v355_v63 = vmax.f32 %v339_v61, 0.0  ;;  %v363_v0 = vmax.f32 %v347_v62, 0.0 }
  0xf5   :  { %371 = vst [vmem:[%s605_s3 + $0x28] sm:$0xff] %v355_v63  ;;  %379 = vst [vmem:[%s605_s3 + $0x68] sm:$0xff] %v363_v0 }

</bundles_post_ra>
